<compile_context>
chip_gen: v7x
topology: tpu7x:2x2x1
jax: 0.10.0
libtpu: 0.0.40
codegen_flags: <defaults>
</compile_context>

<pallas_src>
import jax
import jax.numpy as jnp
from jax.experimental import pallas as pl
from jax.experimental.pallas import tpu as pltpu


def _ds_decoder_kernel(iv_ref, out_ref):
    # iv_ref: (1, 6) f32 full array in VMEM; out_ref: (1, 6) f32 in VMEM.
    iv = iv_ref[...]
    s = jax.nn.sigmoid(iv)                                # EUP transcendentals
    # Per-column scale/offset (scalar literals only, no captured consts):
    #   cols 0..3 -> *1000 + 0   (fx, fy, cx, cy)
    #   col  4    -> *2    - 1   (xi)
    #   col  5    -> *1    + 0   (alpha)
    col = jax.lax.broadcasted_iota(jnp.int32, s.shape, dimension=1)   # (1, 6)
    scale = jnp.where(col < 4, 1000.0, jnp.where(col == 4, 2.0, 1.0))
    offset = jnp.where(col == 4, -1.0, 0.0)
    out_ref[...] = (s * scale + offset).astype(out_ref.dtype)         # (1, 6)


def ds_decoder_forward(input_features, intrinsic_vector):
    """Mirror of DSDecoder.forward.

    input_features: list of NCHW feature maps (only last one's batch dim used)
    intrinsic_vector: (6,) f32 parameter
    returns: (B, 6) f32
    """
    x = input_features[-1]
    B = x.shape[0]
    iv2d = intrinsic_vector.reshape(1, 6).astype(jnp.float32)

    row = pl.pallas_call(
        _ds_decoder_kernel,
        out_shape=jax.ShapeDtypeStruct((1, 6), jnp.float32),
        # Gridless: tiny full arrays live in VMEM, kernel runs once.
        in_specs=[pl.BlockSpec(memory_space=pltpu.MemorySpace.VMEM)],
        out_specs=pl.BlockSpec(memory_space=pltpu.MemorySpace.VMEM),
        cost_estimate=pl.CostEstimate(
            flops=24, transcendentals=12, bytes_accessed=48),
    )(iv2d)

    # B-broadcast done by plain XLA outside the kernel (fuses downstream;
    # keeps kernel cost constant regardless of B).
    return jnp.broadcast_to(row, (B, 6))


def _reference(input_features, intrinsic_vector):
    # Pure-JAX reference of the PyTorch forward semantics.
    x = input_features[-1]
    B = x.shape[0]
    s = jax.nn.sigmoid(intrinsic_vector)
    fx, fy, cx, cy = (s[0:4] * 1000.0)
    xi = s[4] * 2.0 - 1.0
    alpha = s[5] * 1.0
    I = jnp.array([fx, fy, cx, cy, xi, alpha], dtype=jnp.float32)
    return jnp.tile(I[None, :], (B, 1))


if __name__ == "__main__":
    key = jax.random.PRNGKey(0)
    B = 2
    # Synthetic encoder features (NCHW), decreasing spatial resolution.
    num_ch_enc = [4, 8, 16, 32, 64]
    spatial = [16, 8, 4, 2, 1]
    keys = jax.random.split(key, len(num_ch_enc))
    input_features = [
        jax.random.normal(keys[i], (B, c, s, s), dtype=jnp.float32)
        for i, (c, s) in enumerate(zip(num_ch_enc, spatial))
    ]

    # nn.Parameter(-torch.ones(6)) -> deterministic init.
    intrinsic_vector = -jnp.ones((6,), dtype=jnp.float32)

    out = ds_decoder_forward(input_features, intrinsic_vector)
    out = jax.block_until_ready(out)

    ref = _reference(input_features, intrinsic_vector)
    assert out.shape == (B, 6), out.shape
    assert jnp.allclose(out, ref, atol=1e-5), (out, ref)

    print("KERNEL_OK")
</pallas_src>

<mosaic_0001>
module attributes {stable_mosaic.version = 11 : i64} {
  func.func @_ds_decoder_kernel(%arg0: memref<1x6xf32, #tpu.memory_space<vmem>>, %arg1: memref<1x6xf32, #tpu.memory_space<vmem>>) attributes {dimension_semantics = [], scalar_prefetch = 0 : i64, scratch_operands = 0 : i64, tpu.core_type = #tpu.core_type<tc>} {
    %c0 = arith.constant 0 : index
    %c0_0 = arith.constant 0 : index
    %0 = vector.load %arg0[%c0, %c0_0] : memref<1x6xf32, #tpu.memory_space<vmem>>, vector<1x6xf32>
    %1 = arith.negf %0 : vector<1x6xf32>
    %2 = math.exp %1 : vector<1x6xf32>
    %cst = arith.constant 1.000000e+00 : f32
    %3 = vector.broadcast %cst : f32 to vector<1x6xf32>
    %4 = arith.addf %3, %2 : vector<1x6xf32>
    %5 = arith.divf %3, %4 : vector<1x6xf32>
    %6 = tpu.iota {dimensions = array<i32: 1>} : vector<1x6xi32>
    %c4_i32 = arith.constant 4 : i32
    %7 = vector.broadcast %c4_i32 : i32 to vector<1x6xi32>
    %8 = arith.cmpi slt, %6, %7 : vector<1x6xi32>
    %c4_i32_1 = arith.constant 4 : i32
    %9 = vector.broadcast %c4_i32_1 : i32 to vector<1x6xi32>
    %10 = arith.cmpi eq, %6, %9 : vector<1x6xi32>
    %cst_2 = arith.constant 2.000000e+00 : f32
    %cst_3 = arith.constant 1.000000e+00 : f32
    %11 = vector.broadcast %cst_2 : f32 to vector<1x6xf32>
    %12 = vector.broadcast %cst_3 : f32 to vector<1x6xf32>
    %13 = arith.select %10, %11, %12 : vector<1x6xi1>, vector<1x6xf32>
    %cst_4 = arith.constant 1.000000e+03 : f32
    %14 = vector.broadcast %cst_4 : f32 to vector<1x6xf32>
    %15 = arith.select %8, %14, %13 : vector<1x6xi1>, vector<1x6xf32>
    %c4_i32_5 = arith.constant 4 : i32
    %16 = vector.broadcast %c4_i32_5 : i32 to vector<1x6xi32>
    %17 = arith.cmpi eq, %6, %16 : vector<1x6xi32>
    %cst_6 = arith.constant -1.000000e+00 : f32
    %cst_7 = arith.constant 0.000000e+00 : f32
    %18 = vector.broadcast %cst_6 : f32 to vector<1x6xf32>
    %19 = vector.broadcast %cst_7 : f32 to vector<1x6xf32>
    %20 = arith.select %17, %18, %19 : vector<1x6xi1>, vector<1x6xf32>
    %21 = arith.mulf %5, %15 : vector<1x6xf32>
    %22 = arith.addf %21, %20 : vector<1x6xf32>
    %c0_8 = arith.constant 0 : index
    %c0_9 = arith.constant 0 : index
    %23 = vector.load %arg1[%c0_8, %c0_9] : memref<1x6xf32, #tpu.memory_space<vmem>>, vector<1x6xf32>
    tpu.vector_store %arg1[%c0_8, %c0_9], %22 {strides = array<i32>} : memref<1x6xf32, #tpu.memory_space<vmem>>, vector<1x6xf32>,
    return
  }
}

</mosaic_0001>

<bundles_post_ra>
// kernel: tpu_custom_call.1
= control target key start
LH: loop header
LB: loop body
LE: loop exit
PB: predicated region body
PF: predicated region fallthrough
CT: control target
= control target key end

     0   :  { %6 = vsyncpa [#allocation3], 0  ;;  %s149_s0 = inlined_call_operand.hbm [shape: f32[1,6], index: 0, kind: input, shape index: {}]   ;;  %s150_s1 = inlined_call_operand.hbm [shape: f32[1,6], index: 1, kind: output, shape index: {}]  }
   0x1   :  { %7 = vsyncpa [#allocation4], 0  ;;  %s111_s6 = smov [#allocation2]   ;;  %s63_s10 = scalar_lea.hbm %s149_s0, 16 }
   0x2   :  { %s14_s7 = sshll.u32 %s111_s6, 4  ;;  %p64_p0 = scmp.ne.s32.totalorder %s149_s0, %s63_s10  ;;  %s15_s7 = int_to_ptr.vmem [resolvable:$true] %s14_s7 }
   0x3   :  { %p67_p1 = scmp.lt.u32.totalorder %s63_s10, %s149_s0 }
   0x5   :  { %p69_p2 = pnand %p67_p1, %p64_p0 }
   0x7   :  { %72 = shalt.err (!%p69_p2)
}
   0x8   :  { %s73_s15 = scalar_lea.vmem %s15_s7, 16  ;;  %s77_s16 = scalar_lea.vmem %s15_s7, 32 }
   0x9   :  { %p74_p3 = scmp.ne.s32.totalorder %s15_s7, %s73_s15  ;;  %p78_p4 = scmp.lt.s32.totalorder %s15_s7, %s15_s7 }
   0xa   :  { %p79_p5 = scmp.lt.s32.totalorder %s77_s16, %s73_s15 }
   0xc   :  { %p80_p6 = por %p79_p5, %p78_p4 }
   0xe   :  { %p81_p7 = pnand %p80_p6, %p74_p3 }
  0x10   :  { %84 = shalt.err (!%p81_p7)
}
  0x11   :  { %17 = dma.hbm_to_vmem [thread:$0]  %s149_s0, 16, %s15_s7, [#allocation3]  }
  0x12   :  { %107 = dma.done.wait [#allocation3], 16  }
  0x13   :  { %108 = vsyncadd [#allocation3], 4294967280  ;;  %v21_v0 = vld [vmem:[#allocation2] sm:$0x1]  ;;  %v28_v2 = vlaneseq  ;;  %v112_v6 = vmov 1.0   ;;  %v113_v10 = vmov 0.0  }
  0x14   :  { %v54_v1 = vmul.f32 -1.442695, %v21_v0  ;;  %s114_s19 = smov [#allocation5]   ;;  %vm37_vm2 = vcmask 40960  }
  0x15   :  { %v29_v5 = vand.u32 127, %v28_v2  ;;  %s45_s0 = sshll.u32 %s114_s19, 4  ;;  %s46_s0 = int_to_ptr.vmem [resolvable:$true] %s45_s0 }
  0x16   :  { %59 = vpow2.f32 %v54_v1  ;;  %s85_s20 = scalar_lea.vmem %s46_s0, 16  ;;  %s89_s21 = scalar_lea.vmem %s46_s0, 32 }
  0x17   :  { %vm31_vm0 = vcmp.eq.s32.totalorder %v29_v5, 4  ;;  %vm30_vm1 = vcmp.lt.s32.totalorder %v29_v5, 4  ;;  %p86_p8 = scmp.ne.s32.totalorder %s46_s0, %s85_s20  ;;  %p90_p9 = scmp.lt.s32.totalorder %s46_s0, %s46_s0 }
  0x18   :  { %v32_v7 = vsel %vm31_vm0, 2.0, %v112_v6  ;;  %v34_v11 = vsel %vm31_vm0, -1.0, %v113_v10  ;;  %p91_p10 = scmp.lt.s32.totalorder %s89_s21, %s85_s20 }
  0x19   :  { %v33_v8 = vsel %vm30_vm1, 1000.0, %v32_v7 }
  0x1a   :  { %p92_p11 = por %p91_p10, %p90_p9 }
  0x1c   :  { %p93_p12 = pnand %p92_p11, %p86_p8 }
  0x20   :  { %v60_v3 = vpop.eup %59 }
  0x21   :  { %v25_v4 = vadd.f32 1.0, %v60_v3 }
  0x23   :  { %61 = vrcp.f32 %v25_v4 }
  0x2d   :  { %v62_v9 = vpop.eup %61 }
  0x2e   :  { %v35_v12 = vmul.f32 %v62_v9, %v33_v8 }
  0x30   :  { %v36_v13 = vadd.f32 %v35_v12, %v34_v11 }
  0x32   :  { %38 = vst.msk [vmem:[#allocation5] sm:$0x1] %vm37_vm2, %v36_v13 }
  0x33   :  { %96 = shalt.err (!%p93_p12)
}
  0x34   :  { %s97_s24 = scalar_lea.hbm %s150_s1, 16 }
  0x35   :  { %p98_p13 = scmp.ne.s32.totalorder %s150_s1, %s97_s24  ;;  %p101_p0 = scmp.lt.u32.totalorder %s97_s24, %s150_s1 }
  0x37   :  { %p103_p1 = pnand %p101_p0, %p98_p13 }
  0x39   :  { %106 = shalt.err (!%p103_p1)
}
  0x3a   :  { %48 = dma.vmem_to_hbm [thread:$0]  %s46_s0, 16, %s150_s1, [#allocation4]  }
  0x3b   :  { %109 = dma.done.wait [#allocation4], 16  }
  0x3c   :  { %110 = vsyncadd [#allocation4], 4294967280 }
  0x3d   :  { %52 = vsyncpa [#allocation3], 1 }
  0x3e   :  { %53 = vsyncpa [#allocation4], 1 }

</bundles_post_ra>
